<compile_context>
chip_gen: v7x
topology: tpu7x:2x2x1
jax: 0.10.0
libtpu: 0.0.40
codegen_flags: <defaults>
</compile_context>

<pallas_src>
import jax
import jax.numpy as jnp
from jax.experimental import pallas as pl
from jax.experimental.pallas import tpu as pltpu


def _round_up(x, m):
    return ((x + m - 1) // m) * m


def _pick_tile(dim, cap, align):
    """Pick (tile, padded_dim): tile is `align`-aligned, <= cap, chosen to
    minimise padding waste while staying reasonably large (>= cap/4)."""
    d = _round_up(max(dim, 1), align)
    cap = min(_round_up(cap, align), d)
    lo = min(cap, max(align, _round_up(cap // 4, align)))
    best_t, best_p = None, None
    t = cap
    while t >= lo:
        p = _round_up(d, t)
        if best_p is None or p < best_p:   # strict '<': ties keep larger tile
            best_t, best_p = t, p
        t -= align
    return best_t, best_p


def _vmem_limit_bytes():
    try:
        phys = pltpu.get_tpu_info().vmem_capacity_bytes
    except Exception:
        phys = 64 * 1024 * 1024            # conservative (v7x per-TC size)
    return min(int(phys) * 3 // 4, 96 * 1024 * 1024)


def _linear_affine_kernel_fused(x_ref, w_ref, b_ref, o_ref):
    # Single reduction tile: dot + bias + ReLU in one shot, no accumulator.
    y = jnp.dot(x_ref[...], w_ref[...], preferred_element_type=jnp.float32)
    o_ref[...] = jnp.maximum(y + b_ref[...], 0.0)


def _linear_affine_kernel_acc(x_ref, w_ref, b_ref, o_ref):
    # Grid axes: (parallel, parallel, k) with k (reduction over indim) last.
    # o_ref's block index is constant across k, so it stays resident in VMEM
    # and we accumulate straight into it (output is f32).
    k = pl.program_id(2)
    partial = jnp.dot(x_ref[...], w_ref[...], preferred_element_type=jnp.float32)

    @pl.when(k == 0)
    def _():
        o_ref[...] = partial

    @pl.when(k != 0)
    def _():
        o_ref[...] = o_ref[...] + partial

    @pl.when(k == pl.num_programs(2) - 1)
    def _():
        o_ref[...] = jnp.maximum(o_ref[...] + b_ref[...], 0.0)  # bias + ReLU


def make_linear_affine(w, b, *, tm=512, tn=512, tk=1024,
                       compute_dtype=jnp.bfloat16):
    """Build an apply(x) closure. W/bias are padded + cast to the MXU compute
    dtype once here (hoisted out of the per-call path)."""
    K, M = w.shape
    assert b.shape == (M,)

    tk_e, Kp = _pick_tile(K, tk, 128)      # reduction tile
    tn_e, Mp = _pick_tile(M, tn, 128)      # lane-dense output tile

    wp = w if (Kp, Mp) == (K, M) else jnp.pad(w, ((0, Kp - K), (0, Mp - M)))
    wp = wp.astype(compute_dtype)          # bf16 feed for the MXU
    bp = b if Mp == M else jnp.pad(b, (0, Mp - M))
    bp = bp.reshape(1, Mp).astype(jnp.float32)

    vmem_limit = _vmem_limit_bytes()

    def apply(x):
        N, Kx = x.shape
        assert Kx == K
        tm_e, Np = _pick_tile(N, tm, 8)    # sublane-aligned row tile

        xp = x if (Np, Kp) == (N, K) else jnp.pad(x, ((0, Np - N), (0, Kp - K)))
        xp = xp.astype(compute_dtype)

        gi, gj, gk = Np // tm_e, Mp // tn_e, Kp // tk_e
        i_first = gi >= gj                 # bigger parallel axis first (v7x megacore)

        if gk == 1:
            kernel = _linear_affine_kernel_fused
            if i_first:
                grid = (gi, gj)
                x_map = lambda i, j: (i, 0)
                w_map = lambda i, j: (0, j)
                b_map = lambda i, j: (0, j)
                o_map = lambda i, j: (i, j)
            else:
                grid = (gj, gi)
                x_map = lambda j, i: (i, 0)
                w_map = lambda j, i: (0, j)
                b_map = lambda j, i: (0, j)
                o_map = lambda j, i: (i, j)
            dims = ("parallel", "parallel")
        else:
            kernel = _linear_affine_kernel_acc
            if i_first:
                grid = (gi, gj, gk)
                x_map = lambda i, j, k: (i, k)
                w_map = lambda i, j, k: (k, j)
                b_map = lambda i, j, k: (0, j)
                o_map = lambda i, j, k: (i, j)
            else:
                grid = (gj, gi, gk)
                x_map = lambda j, i, k: (i, k)
                w_map = lambda j, i, k: (k, j)
                b_map = lambda j, i, k: (0, j)
                o_map = lambda j, i, k: (i, j)
            dims = ("parallel", "parallel", "arbitrary")

        out = pl.pallas_call(
            kernel,
            out_shape=jax.ShapeDtypeStruct((Np, Mp), jnp.float32),
            grid_spec=pltpu.PrefetchScalarGridSpec(
                num_scalar_prefetch=0,
                grid=grid,
                in_specs=[
                    pl.BlockSpec((tm_e, tk_e), x_map),   # x tile (bf16)
                    pl.BlockSpec((tk_e, tn_e), w_map),   # W tile (bf16)
                    pl.BlockSpec((1, tn_e), b_map),      # bias tile (f32)
                ],
                out_specs=pl.BlockSpec((tm_e, tn_e), o_map),
            ),
            compiler_params=pltpu.CompilerParams(
                dimension_semantics=dims,
                vmem_limit_bytes=vmem_limit,
            ),
        )(xp, wp, bp)

        return out[:N, :M]

    return apply


def linear_affine(x, w, b, **kwargs):
    """y = relu(x @ w + b). x: [N, indim], w: [indim, outdim], b: [outdim]."""
    return make_linear_affine(w, b, **kwargs)(x)


def _reference(x, w, b):
    return jnp.maximum(x @ w + b, 0.0)


if __name__ == "__main__":
    key = jax.random.PRNGKey(0)

    # Case 1: small shapes consistent with LinearAffine(indim=32, outdim=16).
    # Hits the single-k fused path (tiles shrink to the padded dims).
    N, indim, outdim = 8, 32, 16
    k1, k2, k3, key = jax.random.split(key, 4)
    bound = 1.0 / jnp.sqrt(indim)
    x = jax.random.normal(k1, (N, indim), dtype=jnp.float32)
    w = jax.random.uniform(k2, (indim, outdim), minval=-bound, maxval=bound,
                           dtype=jnp.float32)
    b = jax.random.uniform(k3, (outdim,), minval=-bound, maxval=bound,
                           dtype=jnp.float32)

    y = jax.block_until_ready(linear_affine(x, w, b))
    assert y.shape == (N, outdim)
    assert jnp.allclose(y, _reference(x, w, b), atol=1e-2, rtol=1e-2), \
        "mismatch vs reference (small case)"

    # Case 2a: moderate case, default tiles -> single-k fused path, no padding
    # waste (Kp=640, Mp=384 handled by whole-dim tiles).
    N2, indim2, outdim2 = 512, 640, 384
    k1, k2, k3, key = jax.random.split(key, 4)
    bound2 = 1.0 / jnp.sqrt(indim2)
    x2 = jax.random.normal(k1, (N2, indim2), dtype=jnp.float32)
    w2 = jax.random.uniform(k2, (indim2, outdim2), minval=-bound2,
                            maxval=bound2, dtype=jnp.float32)
    b2 = jax.random.uniform(k3, (outdim2,), minval=-bound2, maxval=bound2,
                            dtype=jnp.float32)

    apply2 = make_linear_affine(w2, b2)          # weights padded/cast once
    y2 = jax.block_until_ready(apply2(x2))
    assert y2.shape == (N2, outdim2)
    assert jnp.allclose(y2, _reference(x2, w2, b2), atol=5e-2, rtol=2e-2), \
        "mismatch vs reference (fused path)"

    # Case 2b: same data with small tile caps to exercise the multi-k
    # accumulate-into-output path (grid has >1 reduction tile, no padding waste).
    y3 = jax.block_until_ready(linear_affine(x2, w2, b2, tm=256, tn=128, tk=256))
    assert y3.shape == (N2, outdim2)
    assert jnp.allclose(y3, _reference(x2, w2, b2), atol=5e-2, rtol=2e-2), \
        "mismatch vs reference (multi-k path)"

    print("KERNEL_OK")
</pallas_src>

<mosaic_0001>
module attributes {stable_mosaic.version = 11 : i64} {
  func.func @_linear_affine_kernel_fused(%arg0: i32, %arg1: i32, %arg2: memref<8x128xbf16, #tpu.memory_space<vmem>>, %arg3: memref<128x128xbf16, #tpu.memory_space<vmem>>, %arg4: memref<1x128xf32, #tpu.memory_space<vmem>>, %arg5: memref<8x128xf32, #tpu.memory_space<vmem>>) attributes {dimension_semantics = [#tpu.dimension_semantics<parallel>, #tpu.dimension_semantics<parallel>], iteration_bounds = array<i64: 1, 1>, scalar_prefetch = 0 : i64, scratch_operands = 0 : i64, tpu.core_type = #tpu.core_type<tc>, window_params = [{transform_indices = @transform_0, window_bounds = array<i64: 8, 128>}, {transform_indices = @transform_1, window_bounds = array<i64: 128, 128>}, {transform_indices = @transform_2, window_bounds = array<i64: 1, 128>}, {transform_indices = @transform_3, window_bounds = array<i64: 8, 128>}]} {
    %c0 = arith.constant 0 : index
    %c0_0 = arith.constant 0 : index
    %0 = vector.load %arg2[%c0, %c0_0] : memref<8x128xbf16, #tpu.memory_space<vmem>>, vector<8x128xbf16>
    %c0_1 = arith.constant 0 : index
    %c0_2 = arith.constant 0 : index
    %1 = vector.load %arg3[%c0_1, %c0_2] : memref<128x128xbf16, #tpu.memory_space<vmem>>, vector<128x128xbf16>
    %cst = arith.constant dense<0.000000e+00> : vector<8x128xf32>
    %2 = tpu.matmul %0, %1, %cst {dimension_numbers = #tpu.dot_dimension_numbers<[1], [0], [0], [1], [0, 0, 1, 1], [], []>} : vector<8x128xbf16>, vector<128x128xbf16>, vector<8x128xf32> -> vector<8x128xf32>
    %c0_3 = arith.constant 0 : index
    %c0_4 = arith.constant 0 : index
    %3 = vector.load %arg4[%c0_3, %c0_4] : memref<1x128xf32, #tpu.memory_space<vmem>>, vector<1x128xf32>
    %4 = vector.broadcast %3 : vector<1x128xf32> to vector<8x128xf32>
    %5 = arith.addf %2, %4 : vector<8x128xf32>
    %cst_5 = arith.constant 0.000000e+00 : f32
    %6 = vector.broadcast %cst_5 : f32 to vector<8x128xf32>
    %7 = arith.maximumf %5, %6 : vector<8x128xf32>
    %c0_6 = arith.constant 0 : index
    %c0_7 = arith.constant 0 : index
    %8 = vector.load %arg5[%c0_6, %c0_7] : memref<8x128xf32, #tpu.memory_space<vmem>>, vector<8x128xf32>
    tpu.vector_store %arg5[%c0_6, %c0_7], %7 {strides = array<i32>} : memref<8x128xf32, #tpu.memory_space<vmem>>, vector<8x128xf32>,
    return
  }
  func.func @transform_0(%arg0: i32, %arg1: i32) -> (i32, i32) {
    %c0_i32 = arith.constant 0 : i32
    %c0_i32_0 = arith.constant 0 : i32
    return %arg0, %c0_i32 : i32, i32
  }
  func.func @transform_1(%arg0: i32, %arg1: i32) -> (i32, i32) {
    %c0_i32 = arith.constant 0 : i32
    %c0_i32_0 = arith.constant 0 : i32
    return %c0_i32, %arg1 : i32, i32
  }
  func.func @transform_2(%arg0: i32, %arg1: i32) -> (i32, i32) {
    %c0_i32 = arith.constant 0 : i32
    %c0_i32_0 = arith.constant 0 : i32
    return %c0_i32, %arg1 : i32, i32
  }
  func.func @transform_3(%arg0: i32, %arg1: i32) -> (i32, i32) {
    %c0_i32 = arith.constant 0 : i32
    return %arg0, %arg1 : i32, i32
  }
}

</mosaic_0001>

<bundles_post_ra>
// kernel: tpu_custom_call.1
= control target key start
LH: loop header
LB: loop body
LE: loop exit
PB: predicated region body
PF: predicated region fallthrough
CT: control target
= control target key end

     0   :  { %8 = vsyncpa [#allocation3], 0  ;;  %s370_s0 = inlined_call_operand.hbm [shape: bf16[8,128], index: 0, kind: input, shape index: {}]   ;;  %s371_s1 = inlined_call_operand.hbm [shape: bf16[128,128], index: 1, kind: input, shape index: {}]   ;;  %s372_s2 = inlined_call_operand.vmem [shape: f32[1,128], index: 2, kind: input, shape index: {}]   ;;  %s373_s3 = inlined_call_operand.hbm [shape: f32[8,128], index: 3, kind: output, shape index: {}]  }
   0x1   :  { %9 = vsyncpa [#allocation6], 0 }
   0x2   :  { %10 = vsyncpa [#allocation4], 0  ;;  %s297_s12 = smov [#allocation2]   ;;  %s298_s14 = smov [#allocation5]  }
   0x3   :  { %s17_s13 = sshll.u32 %s297_s12, 4  ;;  %s26_s15 = sshll.u32 %s298_s14, 4  ;;  %s18_s13 = int_to_ptr.vmem [resolvable:$true] %s17_s13  ;;  %s324_s15 = int_to_ptr.vmem [resolvable:$true] %s26_s15 }
   0x4   :  { %s225_s18 = scalar_lea.hbm %s370_s0, 64 }
   0x5   :  { %p226_p0 = scmp.ne.s32.totalorder %s370_s0, %s225_s18  ;;  %p229_p1 = scmp.lt.u32.totalorder %s225_s18, %s370_s0 }
   0x7   :  { %p231_p2 = pnand %p229_p1, %p226_p0 }
   0x9   :  { %234 = shalt.err (!%p231_p2)
}
   0xa   :  { %s235_s23 = scalar_lea.vmem %s18_s13, 64  ;;  %p240_p4 = scmp.lt.s32.totalorder %s18_s13, %s18_s13 }
   0xb   :  { %p236_p3 = scmp.ne.s32.totalorder %s18_s13, %s235_s23  ;;  %p241_p5 = scmp.lt.s32.totalorder %s235_s23, %s235_s23 }
   0xd   :  { %p242_p6 = por %p241_p5, %p240_p4 }
   0xf   :  { %p243_p7 = pnand %p242_p6, %p236_p3 }
  0x11   :  { %246 = shalt.err (!%p243_p7)
}
  0x12   :  { %20 = dma.hbm_to_vmem [thread:$0]  %s370_s0, 64, %s18_s13, [#allocation3]  }
  0x13   :  { %s247_s28 = scalar_lea.hbm %s371_s1, 1024 }
  0x14   :  { %p248_p8 = scmp.ne.s32.totalorder %s371_s1, %s247_s28  ;;  %p251_p9 = scmp.lt.u32.totalorder %s247_s28, %s371_s1 }
  0x16   :  { %p253_p10 = pnand %p251_p9, %p248_p8 }
  0x18   :  { %256 = shalt.err (!%p253_p10)
}
  0x19   :  { %s257_s6 = scalar_lea.vmem %s324_s15, 1024  ;;  %p262_p12 = scmp.lt.s32.totalorder %s324_s15, %s324_s15 }
  0x1a   :  { %p258_p11 = scmp.ne.s32.totalorder %s324_s15, %s257_s6  ;;  %p263_p13 = scmp.lt.s32.totalorder %s257_s6, %s257_s6 }
  0x1c   :  { %p264_p0 = por %p263_p13, %p262_p12 }
  0x1e   :  { %p265_p1 = pnand %p264_p0, %p258_p11 }
  0x20   :  { %268 = shalt.err (!%p265_p1)
}
  0x21   :  { %s299_s0 = smov 64   ;;  %s300_s7 = smov 4  }
  0x22   :  { %32 = dma.hbm_to_vmem [thread:$0]  %s371_s1, 1024, %s324_s15, [#allocation6], %s299_s0, %s299_s0, %s300_s7  }
  0x23   :  { %291 = dma.done.wait [#allocation3], 64  }
  0x24   :  { %292 = vsyncadd [#allocation3], 4294967232 }
  0x25   :  { %293 = dma.done.wait [#allocation6], 1024  }
  0x26   :  { %294 = vsyncadd [#allocation6], 4294966272  ;;  %v301_v0 = vmov 0.0   ;;  %vm302_vm0 = vmmov 0   ;;  %v217_v1 = vld [vmem:[#allocation5] sm:$0xff]   ;;  %v218_v2 = vld [vmem:[#allocation5 + $0x8] sm:$0xff]  }
  0x27   :  { %190 = vmatprep.subr.bf16.mxu0 %v301_v0  ;;  %206 = vmatprep.mubr.msk.bf16.mxu0 %vm302_vm0, %v301_v0  ;;  %v219_v3 = vld [vmem:[#allocation5 + $0x10] sm:$0xff]   ;;  %v220_v4 = vld [vmem:[#allocation5 + $0x18] sm:$0xff]   ;;  %v221_v5 = vld [vmem:[#allocation5 + $0x20] sm:$0xff]   ;;  %s303_s11 = smov [#allocation7]  }
  0x28   :  { %191 = vmatpush3.bf16.msra.mxu0 %v217_v1  ;;  %v222_v6 = vld [vmem:[#allocation5 + $0x28] sm:$0xff]   ;;  %v223_v7 = vld [vmem:[#allocation5 + $0x30] sm:$0xff]   ;;  %v224_v8 = vld [vmem:[#allocation5 + $0x38] sm:$0xff]   ;;  %s162_s12 = sshll.u32 %s303_s11, 4  ;;  %s163_s12 = int_to_ptr.vmem [resolvable:$true] %s162_s12 }
  0x29   :  { %192 = vmatprep.subr.bf16.mxu0 %v301_v0  ;;  %v42_v9 = vld [vmem:[#allocation2] sm:$0xf]  ;;  %s269_s13 = scalar_lea.vmem %s163_s12, 128  ;;  %p274_p3 = scmp.lt.s32.totalorder %s163_s12, %s163_s12 }
  0x2a   :  { %v172_v10 = vld [vmem:[%s372_s2] ss:$0 sm:$0xff]  ;;  %p270_p2 = scmp.ne.s32.totalorder %s163_s12, %s269_s13  ;;  %p275_p4 = scmp.lt.s32.totalorder %s269_s13, %s269_s13 }
  0x2c   :  { %193 = vmatpush3.bf16.msra.mxu0 %v218_v2  ;;  %p276_p5 = por %p275_p4, %p274_p3 }
  0x2d   :  { %194 = vmatprep.subr.bf16.mxu0 %v301_v0 }
  0x2e   :  { %p277_p6 = pnand %p276_p5, %p270_p2 }
  0x30   :  { %195 = vmatpush3.bf16.msra.mxu0 %v219_v3 }
  0x31   :  { %196 = vmatprep.subr.bf16.mxu0 %v301_v0 }
  0x34   :  { %197 = vmatpush3.bf16.msra.mxu0 %v220_v4 }
  0x35   :  { %198 = vmatprep.subr.bf16.mxu0 %v301_v0 }
  0x38   :  { %199 = vmatpush3.bf16.msra.mxu0 %v221_v5 }
  0x39   :  { %200 = vmatprep.subr.bf16.mxu0 %v301_v0 }
  0x3c   :  { %201 = vmatpush3.bf16.msra.mxu0 %v222_v6 }
  0x3d   :  { %202 = vmatprep.subr.bf16.mxu0 %v301_v0 }
  0x40   :  { %203 = vmatpush3.bf16.msra.mxu0 %v223_v7 }
  0x41   :  { %204 = vmatprep.subr.bf16.mxu0 %v301_v0 }
  0x44   :  { %205 = vmatpush3.bf16.msra.mxu0 %v224_v8 }
  0x47   :  { %207 = vmatmul.mubr.bf16.vlgmr.msra.gmra.mrb[0].mxu0 %v42_v9 }
 0x11a   :  { %v148_v11 = vpop.f32.mrb[0].mxu0 }
 0x11b   :  { %v149_v12 = vadd.f32 %v172_v10, %v148_v11  ;;  %v208_v13 = vpop.f32.mrb[1].mxu0 }
 0x11c   :  { %v151_v14 = vpop.f32.mrb[2].mxu0 }
 0x11d   :  { %v154_v15 = vmax.f32 %v149_v12, 0.0  ;;  %v209_v16 = vpop.f32.mrb[3].mxu0 }
 0x11f   :  { %155 = vst [vmem:[#allocation7] sm:$0xff] %v154_v15 }
 0x120   :  { %280 = shalt.err (!%p277_p6)
}
 0x121   :  { %s281_s2 = scalar_lea.hbm %s373_s3, 128 }
 0x122   :  { %p282_p7 = scmp.ne.s32.totalorder %s373_s3, %s281_s2  ;;  %p285_p8 = scmp.lt.u32.totalorder %s281_s2, %s373_s3 }
 0x124   :  { %p287_p9 = pnand %p285_p8, %p282_p7 }
 0x126   :  { %290 = shalt.err (!%p287_p9)
}
 0x127   :  { %165 = dma.vmem_to_hbm [thread:$0]  %s163_s12, 128, %s373_s3, [#allocation4]  }
 0x128   :  { %295 = dma.done.wait [#allocation4], 128  }
 0x129   :  { %296 = vsyncadd [#allocation4], 4294967168 }
 0x12a   :  { %169 = vsyncpa [#allocation3], 1 }
 0x12b   :  { %170 = vsyncpa [#allocation6], 1 }
 0x12c   :  { %171 = vsyncpa [#allocation4], 1 }

</bundles_post_ra>
